<compile_context>
chip_gen: v7x
topology: tpu7x:2x2x1
jax: 0.10.0
libtpu: 0.0.40
codegen_flags: <defaults>
</compile_context>

<pallas_src>
import functools

import jax
import jax.numpy as jnp
from jax.experimental import pallas as pl
from jax.experimental.pallas import tpu as pltpu


def _round_up(x, m):
    return ((x + m - 1) // m) * m


def _pick_t_oh(oh, ow, cap_rows=2048):
    """Pick the OH tile size.

    Requirements:
      * t_oh divides OH (exact tiling, no tail masking needed),
      * rows = t_oh*OW is a multiple of 128 (lane-dense pass-2 NCHW output
        blocks), unless we fall back to a single spatial tile (t_oh == OH,
        rows == OH*OW, always a legal full-dim block),
      * rows <= cap_rows to bound the per-step VMEM footprint.
    """
    cands = [t for t in range(1, oh + 1)
             if oh % t == 0 and (t * ow) % 128 == 0 and t * ow <= cap_rows]
    if cands:
        return max(cands, key=lambda t: t * ow)
    # TODO(synk): pad the spatial axis + cdiv tiling for very large OH*OW that
    # is not 128-divisible (the single-tile fallback can get VMEM-heavy).
    return oh


def _make_conv_stats_kernel(kh, kw, stride, t_oh, ow, c_in, c_pad):
    """Pass 1: conv as KH tap-matmuls (register accumulate) + per-tile stats."""
    kwc = kw * c_in
    rows = t_oh * ow

    def kernel(xw_ref, w_ref, y_ref, stats_ref):
        # xw_ref:    (1, Hp, OW, kw*C_in) bf16  width-packed padded image (batch b)
        # w_ref:     (KH, kw*C_in, c_pad) bf16
        # y_ref:     (1, 1, rows, c_pad)  bf16  conv output tile
        # stats_ref: (1, 1, 2, c_pad)     f32   [sum, sum_sq] over tile rows
        t = pl.program_id(1)
        row0 = t * (t_oh * stride)
        acc = None
        for i in range(kh):                     # static, unrolled: only KH taps
            if stride == 1:
                xs = xw_ref[0, pl.ds(row0 + i, t_oh), :, :]
            else:
                xs = xw_ref[0, pl.ds(row0 + i, t_oh, stride), :, :]
            xs = xs.reshape(rows, kwc)          # (rows, kw*C_in)
            d = jnp.dot(xs, w_ref[i], preferred_element_type=jnp.float32)
            acc = d if acc is None else acc + d  # no per-tap VMEM RMW / zero-fill
        # TODO(synk): fold the KH taps into one K = kh*kw*C_in matmul (lane
        # concat of the tap operands), or MRB accumulation on v7x.
        y_ref[...] = acc.astype(y_ref.dtype).reshape(1, 1, rows, c_pad)
        s = jnp.sum(acc, axis=0, keepdims=True)
        sq = jnp.sum(acc * acc, axis=0, keepdims=True)
        stats_ref[...] = jnp.concatenate([s, sq], axis=0).reshape(1, 1, 2, c_pad)

    return kernel


def _make_bn_relu_nchw_kernel(c_out):
    """Pass 2: y*scale + shift, ReLU, in-kernel transpose -> NCHW tile."""

    def kernel(y_ref, scale_ref, shift_ref, o_ref):
        # y_ref: (1, 1, rows, c_pad) bf16; scale/shift: (1, c_pad) f32
        # o_ref: (1, c_out, rows)    f32  -- NCHW tile, spatial on lanes.
        y = y_ref[0, 0].astype(jnp.float32)
        z = jnp.maximum(y * scale_ref[...] + shift_ref[...], 0.0)
        o_ref[0] = z.T[:c_out, :]    # drop channel padding; no wrapper transpose

    return kernel


@functools.partial(jax.jit, static_argnames=("stride", "padding"))
def basic_conv2d(x_nchw, weight, gamma, beta, *, stride=1, padding=1):
    """BasicConv2d forward: conv(bias=False) -> BN(batch stats, eps=1e-3) -> ReLU.

    x_nchw: (N, C_in, H, W) f32; weight: (C_out, C_in, KH, KW); gamma/beta: (C_out,).
    Returns (N, C_out, OH, OW) f32 in NCHW, matching the PyTorch module.
    """
    eps = 1e-3
    n, c_in, h, w = x_nchw.shape
    c_out, _, kh, kw = weight.shape
    oh = (h + 2 * padding - kh) // stride + 1
    ow = (w + 2 * padding - kw) // stride + 1
    hp = h + 2 * padding
    # Lane-dense channel padding; 256-multiple when C_out > 128 fills the
    # 256-wide MXU N-dim on v6e/v7x (128 is already full width on v5e).
    c_pad = 128 if c_out <= 128 else _round_up(c_out, 256)
    kwc = kw * c_in
    m = n * oh * ow
    s_sp = oh * ow

    # ---- Layout glue (outside the hot loop) --------------------------------
    # NCHW -> NHWC, spatial zero-pad, then pack the kw width-taps into channels:
    # xw[n, h, w_out, j*C_in:(j+1)*C_in] = x_pad[n, h, w_out*stride + j, :].
    x_nhwc = jnp.transpose(x_nchw, (0, 2, 3, 1))
    x_p = jnp.pad(x_nhwc, ((0, 0), (padding, padding), (padding, padding), (0, 0)))
    xw = jnp.concatenate(
        [x_p[:, :, j:j + (ow - 1) * stride + 1:stride, :] for j in range(kw)],
        axis=-1).astype(jnp.bfloat16)                 # (N, Hp, OW, kw*C_in)

    # Weight: (C_out, C_in, KH, KW) -> (KH, KW*C_in, c_pad), zero-padded cols.
    w3 = jnp.transpose(weight, (2, 3, 1, 0)).reshape(kh, kwc, c_out)
    w3 = jnp.pad(w3, ((0, 0), (0, 0), (0, c_pad - c_out))).astype(jnp.bfloat16)

    # ---- Tiling -------------------------------------------------------------
    t_oh = _pick_t_oh(oh, ow)
    n_t = oh // t_oh
    rows = t_oh * ow

    # ---- Pass 1: conv + per-tile sum / sum-of-squares -----------------------
    x_blk = hp * ow * kwc * 2
    w_bytes = kh * kwc * c_pad * 2
    y_blk = rows * c_pad * 2
    st_blk = 2 * c_pad * 4
    vmem1 = (2 * (x_blk + w_bytes + y_blk + st_blk)      # double-buffered blocks
             + 2 * rows * c_pad * 4                       # f32 acc + temp
             + kh * rows * kwc * 2)                       # tap operands
    vmem1 = min(max(int(1.25 * vmem1), 32 * 2**20), 56 * 2**20)  # v7x-safe cap

    cost1 = pl.CostEstimate(
        flops=2 * m * (kh * kwc) * c_pad, transcendentals=0,
        bytes_accessed=xw.size * 2 + w3.size * 2 + m * c_pad * 2
                       + n * n_t * 2 * c_pad * 4)
    conv_kernel = _make_conv_stats_kernel(kh, kw, stride, t_oh, ow, c_in, c_pad)
    y4, stats = pl.pallas_call(
        conv_kernel,
        grid=(n, n_t),
        in_specs=[
            pl.BlockSpec((1, hp, ow, kwc), lambda b, t: (b, 0, 0, 0)),
            pl.BlockSpec((kh, kwc, c_pad), lambda b, t: (0, 0, 0)),
        ],
        out_specs=[
            pl.BlockSpec((1, 1, rows, c_pad), lambda b, t: (b, t, 0, 0)),
            pl.BlockSpec((1, 1, 2, c_pad), lambda b, t: (b, t, 0, 0)),
        ],
        out_shape=[
            jax.ShapeDtypeStruct((n, n_t, rows, c_pad), jnp.bfloat16),
            jax.ShapeDtypeStruct((n, n_t, 2, c_pad), jnp.float32),
        ],
        compiler_params=pltpu.CompilerParams(
            dimension_semantics=("parallel", "parallel"),
            vmem_limit_bytes=vmem1),
        cost_estimate=cost1,
    )(xw, w3)
    # TODO(synk): for very large images on v7x, tile the input along H with a
    # halo window instead of DMAing the whole padded image per batch block.

    # ---- Finalize global BatchNorm statistics (tiny, f32) -------------------
    cnt = jnp.float32(m)
    sum_c = jnp.sum(stats[:, :, 0, :], axis=(0, 1))
    ssq_c = jnp.sum(stats[:, :, 1, :], axis=(0, 1))
    mean = sum_c / cnt
    # NOTE: E[x^2]-E[x]^2 in f32 is fine at these sizes; switch to a centered
    # two-pass variance for very large M / strongly offset activations.
    var = jnp.maximum(ssq_c / cnt - mean * mean, 0.0)
    inv_std = jax.lax.rsqrt(var + eps)
    gamma_p = jnp.pad(gamma.astype(jnp.float32), (0, c_pad - c_out))
    beta_p = jnp.pad(beta.astype(jnp.float32), (0, c_pad - c_out))
    scale = (gamma_p * inv_std).reshape(1, c_pad)
    shift = (beta_p - mean * gamma_p * inv_std).reshape(1, c_pad)

    # ---- Pass 2: BN + ReLU, fused channel-slice + NCHW transpose ------------
    cost2 = pl.CostEstimate(flops=2 * m * c_pad, transcendentals=0,
                            bytes_accessed=m * c_pad * 2 + n * c_out * s_sp * 4)
    bn_kernel = _make_bn_relu_nchw_kernel(c_out)
    out3 = pl.pallas_call(
        bn_kernel,
        grid=(n, n_t),
        in_specs=[
            pl.BlockSpec((1, 1, rows, c_pad), lambda b, t: (b, t, 0, 0)),
            pl.BlockSpec((1, c_pad), lambda b, t: (0, 0)),
            pl.BlockSpec((1, c_pad), lambda b, t: (0, 0)),
        ],
        out_specs=pl.BlockSpec((1, c_out, rows), lambda b, t: (b, 0, t)),
        out_shape=jax.ShapeDtypeStruct((n, c_out, s_sp), jnp.float32),
        compiler_params=pltpu.CompilerParams(
            dimension_semantics=("parallel", "parallel")),
        cost_estimate=cost2,
    )(y4, scale, shift)

    # (N, C_out, OH*OW) is already NCHW order: free reshape, no transpose, no
    # channel-padding writeback.
    return out3.reshape(n, c_out, oh, ow)


def _reference(x_nchw, weight, gamma, beta, stride=1, padding=1, eps=1e-3):
    """Pure-JAX reference with the same bf16-operand / f32-accumulate contract."""
    y = jax.lax.conv_general_dilated(
        x_nchw.astype(jnp.bfloat16), weight.astype(jnp.bfloat16),
        window_strides=(stride, stride),
        padding=[(padding, padding), (padding, padding)],
        dimension_numbers=("NCHW", "OIHW", "NCHW"),
        preferred_element_type=jnp.float32)
    mean = jnp.mean(y, axis=(0, 2, 3), keepdims=True)
    var = jnp.mean((y - mean) ** 2, axis=(0, 2, 3), keepdims=True)
    y_hat = (y - mean) * jax.lax.rsqrt(var + eps)
    z = y_hat * gamma.reshape(1, -1, 1, 1) + beta.reshape(1, -1, 1, 1)
    return jnp.maximum(z, 0.0)


if __name__ == "__main__":
    # BasicConv2d(in_channels=4, out_channels=8, kernel_size=3, padding=1)
    N, C_IN, H, W = 2, 4, 16, 16
    C_OUT, KH, KW = 8, 3, 3
    STRIDE, PADDING = 1, 1

    key = jax.random.PRNGKey(0)
    kx, kw_, kg, kb = jax.random.split(key, 4)
    x = jax.random.normal(kx, (N, C_IN, H, W), dtype=jnp.float32)
    weight = jax.random.normal(kw_, (C_OUT, C_IN, KH, KW), dtype=jnp.float32) * 0.1
    gamma = 1.0 + 0.1 * jax.random.normal(kg, (C_OUT,), dtype=jnp.float32)
    beta = 0.1 * jax.random.normal(kb, (C_OUT,), dtype=jnp.float32)

    out = basic_conv2d(x, weight, gamma, beta, stride=STRIDE, padding=PADDING)
    out = jax.block_until_ready(out)

    ref = _reference(x, weight, gamma, beta, STRIDE, PADDING)
    assert out.shape == (N, C_OUT, H, W), out.shape
    max_err = float(jnp.max(jnp.abs(out - ref)))
    # bf16 conv intermediate -> slightly looser tolerance than pure f32.
    assert jnp.allclose(out, ref, atol=2e-2, rtol=2e-2), max_err

    print("KERNEL_OK")
</pallas_src>

<mosaic_0001>
module attributes {stable_mosaic.version = 11 : i64} {
  func.func @kernel(%arg0: i32, %arg1: i32, %arg2: memref<1x1x256x128xbf16, #tpu.memory_space<vmem>>, %arg3: memref<1x128xf32, #tpu.memory_space<vmem>>, %arg4: memref<1x128xf32, #tpu.memory_space<vmem>>, %arg5: memref<1x8x256xf32, #tpu.memory_space<vmem>>) attributes {dimension_semantics = [#tpu.dimension_semantics<parallel>, #tpu.dimension_semantics<parallel>], iteration_bounds = array<i64: 2, 1>, scalar_prefetch = 0 : i64, scratch_operands = 0 : i64, tpu.core_type = #tpu.core_type<tc>, window_params = [{transform_indices = @transform_0, window_bounds = array<i64: 1, 1, 256, 128>}, {pipeline_mode = #tpu.pipeline_mode<synchronous>, transform_indices = @transform_1, window_bounds = array<i64: 1, 128>}, {pipeline_mode = #tpu.pipeline_mode<synchronous>, transform_indices = @transform_2, window_bounds = array<i64: 1, 128>}, {transform_indices = @transform_3, window_bounds = array<i64: 1, 8, 256>}]} {
    %c0 = arith.constant 0 : index
    %c0_0 = arith.constant 0 : index
    %c0_1 = arith.constant 0 : index
    %c0_2 = arith.constant 0 : index
    %0 = vector.load %arg2[%c0, %c0_0, %c0_1, %c0_2] : memref<1x1x256x128xbf16, #tpu.memory_space<vmem>>, vector<1x1x256x128xbf16>
    %1 = vector.shape_cast %0 : vector<1x1x256x128xbf16> to vector<256x128xbf16>
    %2 = arith.extf %1 : vector<256x128xbf16> to vector<256x128xf32>
    %c0_3 = arith.constant 0 : index
    %c0_4 = arith.constant 0 : index
    %3 = vector.load %arg3[%c0_3, %c0_4] : memref<1x128xf32, #tpu.memory_space<vmem>>, vector<1x128xf32>
    %4 = vector.broadcast %3 : vector<1x128xf32> to vector<256x128xf32>
    %5 = arith.mulf %2, %4 : vector<256x128xf32>
    %c0_5 = arith.constant 0 : index
    %c0_6 = arith.constant 0 : index
    %6 = vector.load %arg4[%c0_5, %c0_6] : memref<1x128xf32, #tpu.memory_space<vmem>>, vector<1x128xf32>
    %7 = vector.broadcast %6 : vector<1x128xf32> to vector<256x128xf32>
    %8 = arith.addf %5, %7 : vector<256x128xf32>
    %cst = arith.constant 0.000000e+00 : f32
    %9 = vector.broadcast %cst : f32 to vector<256x128xf32>
    %10 = arith.maximumf %8, %9 : vector<256x128xf32>
    %11 = tpu.transpose %10, [1, 0] : vector<256x128xf32> -> vector<128x256xf32>
    %12 = vector.extract_strided_slice %11 {offsets = [0, 0], sizes = [8, 256], strides = [1, 1]} : vector<128x256xf32> to vector<8x256xf32>
    %c0_7 = arith.constant 0 : index
    %c0_8 = arith.constant 0 : index
    %c0_9 = arith.constant 0 : index
    %13 = vector.load %arg5[%c0_7, %c0_8, %c0_9] : memref<1x8x256xf32, #tpu.memory_space<vmem>>, vector<1x8x256xf32>
    %14 = vector.shape_cast %13 : vector<1x8x256xf32> to vector<8x256xf32>
    %15 = vector.shape_cast %12 : vector<8x256xf32> to vector<1x8x256xf32>
    tpu.vector_store %arg5[%c0_7, %c0_8, %c0_9], %15 {strides = array<i32>} : memref<1x8x256xf32, #tpu.memory_space<vmem>>, vector<1x8x256xf32>,
    return
  }
  func.func @transform_0(%arg0: i32, %arg1: i32) -> (i32, i32, i32, i32) {
    %c0_i32 = arith.constant 0 : i32
    %c0_i32_0 = arith.constant 0 : i32
    %c0_i32_1 = arith.constant 0 : i32
    return %arg0, %arg1, %c0_i32, %c0_i32_0 : i32, i32, i32, i32
  }
  func.func @transform_1(%arg0: i32, %arg1: i32) -> (i32, i32) {
    %c0_i32 = arith.constant 0 : i32
    %c0_i32_0 = arith.constant 0 : i32
    %c0_i32_1 = arith.constant 0 : i32
    return %c0_i32, %c0_i32_0 : i32, i32
  }
  func.func @transform_2(%arg0: i32, %arg1: i32) -> (i32, i32) {
    %c0_i32 = arith.constant 0 : i32
    %c0_i32_0 = arith.constant 0 : i32
    %c0_i32_1 = arith.constant 0 : i32
    return %c0_i32, %c0_i32_0 : i32, i32
  }
  func.func @transform_3(%arg0: i32, %arg1: i32) -> (i32, i32, i32) {
    %c0_i32 = arith.constant 0 : i32
    %c0_i32_0 = arith.constant 0 : i32
    return %arg0, %c0_i32, %arg1 : i32, i32, i32
  }
}

module attributes {stable_mosaic.version = 11 : i64} {
  func.func @kernel(%arg0: i32, %arg1: i32, %arg2: memref<1x18x16x12xbf16, #tpu.memory_space<vmem>>, %arg3: memref<3x12x128xbf16, #tpu.memory_space<vmem>>, %arg4: memref<1x1x256x128xbf16, #tpu.memory_space<vmem>>, %arg5: memref<1x1x2x128xf32, #tpu.memory_space<vmem>>) attributes {dimension_semantics = [#tpu.dimension_semantics<parallel>, #tpu.dimension_semantics<parallel>], iteration_bounds = array<i64: 2, 1>, scalar_prefetch = 0 : i64, scratch_operands = 0 : i64, tpu.core_type = #tpu.core_type<tc>, window_params = [{transform_indices = @transform_0, window_bounds = array<i64: 1, 18, 16, 12>}, {pipeline_mode = #tpu.pipeline_mode<synchronous>, transform_indices = @transform_1, window_bounds = array<i64: 3, 12, 128>}, {transform_indices = @transform_2, window_bounds = array<i64: 1, 1, 256, 128>}, {transform_indices = @transform_3, window_bounds = array<i64: 1, 1, 2, 128>}]} {
    %c16_i32 = arith.constant 16 : i32
    %0 = arith.muli %arg1, %c16_i32 : i32
    %c0_i32 = arith.constant 0 : i32
    %1 = arith.addi %0, %c0_i32 : i32
    %c0 = arith.constant 0 : index
    %2 = arith.index_cast %1 : i32 to index
    %c0_0 = arith.constant 0 : index
    %c0_1 = arith.constant 0 : index
    %3 = vector.load %arg2[%c0, %2, %c0_0, %c0_1] : memref<1x18x16x12xbf16, #tpu.memory_space<vmem>>, vector<1x16x16x12xbf16>
    %4 = vector.shape_cast %3 : vector<1x16x16x12xbf16> to vector<16x16x12xbf16>
    %5 = vector.shape_cast %4 : vector<16x16x12xbf16> to vector<256x12xbf16>
    %c0_2 = arith.constant 0 : index
    %c0_3 = arith.constant 0 : index
    %c0_4 = arith.constant 0 : index
    %6 = vector.load %arg3[%c0_2, %c0_3, %c0_4] : memref<3x12x128xbf16, #tpu.memory_space<vmem>>, vector<1x12x128xbf16>
    %7 = vector.shape_cast %6 : vector<1x12x128xbf16> to vector<12x128xbf16>
    %cst = arith.constant dense<0.000000e+00> : vector<256x128xf32>
    %8 = tpu.matmul %5, %7, %cst {dimension_numbers = #tpu.dot_dimension_numbers<[1], [0], [0], [1], [0, 0, 1, 1], [], []>} : vector<256x12xbf16>, vector<12x128xbf16>, vector<256x128xf32> -> vector<256x128xf32>
    %c1_i32 = arith.constant 1 : i32
    %9 = arith.addi %0, %c1_i32 : i32
    %c0_5 = arith.constant 0 : index
    %10 = arith.index_cast %9 : i32 to index
    %c0_6 = arith.constant 0 : index
    %c0_7 = arith.constant 0 : index
    %11 = vector.load %arg2[%c0_5, %10, %c0_6, %c0_7] : memref<1x18x16x12xbf16, #tpu.memory_space<vmem>>, vector<1x16x16x12xbf16>
    %12 = vector.shape_cast %11 : vector<1x16x16x12xbf16> to vector<16x16x12xbf16>
    %13 = vector.shape_cast %12 : vector<16x16x12xbf16> to vector<256x12xbf16>
    %c1 = arith.constant 1 : index
    %c0_8 = arith.constant 0 : index
    %c0_9 = arith.constant 0 : index
    %14 = vector.load %arg3[%c1, %c0_8, %c0_9] : memref<3x12x128xbf16, #tpu.memory_space<vmem>>, vector<1x12x128xbf16>
    %15 = vector.shape_cast %14 : vector<1x12x128xbf16> to vector<12x128xbf16>
    %cst_10 = arith.constant dense<0.000000e+00> : vector<256x128xf32>
    %16 = tpu.matmul %13, %15, %cst_10 {dimension_numbers = #tpu.dot_dimension_numbers<[1], [0], [0], [1], [0, 0, 1, 1], [], []>} : vector<256x12xbf16>, vector<12x128xbf16>, vector<256x128xf32> -> vector<256x128xf32>
    %17 = arith.addf %8, %16 : vector<256x128xf32>
    %c2_i32 = arith.constant 2 : i32
    %18 = arith.addi %0, %c2_i32 : i32
    %c0_11 = arith.constant 0 : index
    %19 = arith.index_cast %18 : i32 to index
    %c0_12 = arith.constant 0 : index
    %c0_13 = arith.constant 0 : index
    %20 = vector.load %arg2[%c0_11, %19, %c0_12, %c0_13] : memref<1x18x16x12xbf16, #tpu.memory_space<vmem>>, vector<1x16x16x12xbf16>
    %21 = vector.shape_cast %20 : vector<1x16x16x12xbf16> to vector<16x16x12xbf16>
    %22 = vector.shape_cast %21 : vector<16x16x12xbf16> to vector<256x12xbf16>
    %c2 = arith.constant 2 : index
    %c0_14 = arith.constant 0 : index
    %c0_15 = arith.constant 0 : index
    %23 = vector.load %arg3[%c2, %c0_14, %c0_15] : memref<3x12x128xbf16, #tpu.memory_space<vmem>>, vector<1x12x128xbf16>
    %24 = vector.shape_cast %23 : vector<1x12x128xbf16> to vector<12x128xbf16>
    %cst_16 = arith.constant dense<0.000000e+00> : vector<256x128xf32>
    %25 = tpu.matmul %22, %24, %cst_16 {dimension_numbers = #tpu.dot_dimension_numbers<[1], [0], [0], [1], [0, 0, 1, 1], [], []>} : vector<256x12xbf16>, vector<12x128xbf16>, vector<256x128xf32> -> vector<256x128xf32>
    %26 = arith.addf %17, %25 : vector<256x128xf32>
    %27 = arith.truncf %26 : vector<256x128xf32> to vector<256x128xbf16>
    %28 = vector.shape_cast %27 : vector<256x128xbf16> to vector<1x1x256x128xbf16>
    %c0_17 = arith.constant 0 : index
    %c0_18 = arith.constant 0 : index
    %c0_19 = arith.constant 0 : index
    %c0_20 = arith.constant 0 : index
    %29 = vector.load %arg4[%c0_17, %c0_18, %c0_19, %c0_20] : memref<1x1x256x128xbf16, #tpu.memory_space<vmem>>, vector<1x1x256x128xbf16>
    tpu.vector_store %arg4[%c0_17, %c0_18, %c0_19, %c0_20], %28 {strides = array<i32>} : memref<1x1x256x128xbf16, #tpu.memory_space<vmem>>, vector<1x1x256x128xbf16>,
    %cst_21 = arith.constant dense<0.000000e+00> : vector<128xf32>
    %30 = vector.multi_reduction <add>, %26, %cst_21 [0] : vector<256x128xf32> to vector<128xf32>
    %31 = vector.shape_cast %30 : vector<128xf32> to vector<1x128xf32>
    %32 = arith.mulf %26, %26 : vector<256x128xf32>
    %cst_22 = arith.constant dense<0.000000e+00> : vector<128xf32>
    %33 = vector.multi_reduction <add>, %32, %cst_22 [0] : vector<256x128xf32> to vector<128xf32>
    %34 = vector.shape_cast %33 : vector<128xf32> to vector<1x128xf32>
    %35 = tpu.concatenate %31, %34 in 0 : vector<1x128xf32>, vector<1x128xf32> -> vector<2x128xf32>
    %36 = vector.shape_cast %35 : vector<2x128xf32> to vector<1x1x2x128xf32>
    %c0_23 = arith.constant 0 : index
    %c0_24 = arith.constant 0 : index
    %c0_25 = arith.constant 0 : index
    %c0_26 = arith.constant 0 : index
    %37 = vector.load %arg5[%c0_23, %c0_24, %c0_25, %c0_26] : memref<1x1x2x128xf32, #tpu.memory_space<vmem>>, vector<1x1x2x128xf32>
    tpu.vector_store %arg5[%c0_23, %c0_24, %c0_25, %c0_26], %36 {strides = array<i32>} : memref<1x1x2x128xf32, #tpu.memory_space<vmem>>, vector<1x1x2x128xf32>,
    return
  }
  func.func @transform_0(%arg0: i32, %arg1: i32) -> (i32, i32, i32, i32) {
    %c0_i32 = arith.constant 0 : i32
    %c0_i32_0 = arith.constant 0 : i32
    %c0_i32_1 = arith.constant 0 : i32
    %c0_i32_2 = arith.constant 0 : i32
    return %arg0, %c0_i32, %c0_i32_0, %c0_i32_1 : i32, i32, i32, i32
  }
  func.func @transform_1(%arg0: i32, %arg1: i32) -> (i32, i32, i32) {
    %c0_i32 = arith.constant 0 : i32
    %c0_i32_0 = arith.constant 0 : i32
    %c0_i32_1 = arith.constant 0 : i32
    %c0_i32_2 = arith.constant 0 : i32
    return %c0_i32, %c0_i32_0, %c0_i32_1 : i32, i32, i32
  }
  func.func @transform_2(%arg0: i32, %arg1: i32) -> (i32, i32, i32, i32) {
    %c0_i32 = arith.constant 0 : i32
    %c0_i32_0 = arith.constant 0 : i32
    %c0_i32_1 = arith.constant 0 : i32
    return %arg0, %arg1, %c0_i32, %c0_i32_0 : i32, i32, i32, i32
  }
  func.func @transform_3(%arg0: i32, %arg1: i32) -> (i32, i32, i32, i32) {
    %c0_i32 = arith.constant 0 : i32
    %c0_i32_0 = arith.constant 0 : i32
    %c0_i32_1 = arith.constant 0 : i32
    return %arg0, %arg1, %c0_i32, %c0_i32_0 : i32, i32, i32, i32
  }
}

</mosaic_0001>

<bundles_post_ra>
// kernel: basic_conv2d.3
= control target key start
LH: loop header
LB: loop body
LE: loop exit
PB: predicated region body
PF: predicated region fallthrough
CT: control target
= control target key end

     0   :  { %s700_s12 = smov 0   ;;  %s702_s13 = smov 0   ;;  %s829_s0 = inlined_call_operand.vmem [shape: bf16[2,1,256,128], index: 0, kind: input, shape index: {}]   ;;  %s830_s1 = inlined_call_operand.vmem [shape: f32[1,128], index: 1, kind: input, shape index: {}]   ;;  %s831_s2 = inlined_call_operand.vmem [shape: f32[1,128], index: 2, kind: input, shape index: {}]   ;;  %s832_s3 = inlined_call_operand.vmem [shape: f32[2,8,256], index: 3, kind: output, shape index: {}]  }
   0x1   :  { %s704_s14 = smov 0  }
   0x2 LB: > { %s25_s15 = sadd.s32 1, %s674_s13  ;;  %p542_p0 = scmp.ge.s32.totalorder %s678_s14, 1  ;;  %s678_s14 = sphi %s704_s14, %s13_s14   ;;  %s674_s13 = sphi %s702_s13, %s834_s13   ;;  %s670_s12 = sphi %s700_s12, %s833_s12  }
   0x3   : > { %p27_p1 = scmp.ge.s32.totalorder %s25_s15, 2  ;;  %p157_p2 = scmp.lt.s32.totalorder %s678_s14, 3 }
   0x5   : > { %s836_s15 = smov (%p27_p1, %s25_s15), 0  ;;  %p158_p3 = pnand %p542_p0, %p157_p2 }
   0x6   : > { %p189_p4 = scmp.lt.s32.totalorder (!%p158_p3), %s670_s12, 1  ;;  %v729_v0 = vld [vmem:[%s830_s1] ss:$0 sm:$0xff] (!%p158_p3) }
   0x7   : > { %161 = sbr.rel (%p158_p3) target bundleno = 157 (0x9d), region = 32  ;;  %v738_v9 = vld [vmem:[%s831_s2] ss:$0 sm:$0xff] (!%p158_p3) }
   0xe   : > { %s838_s12 = smov (!%p189_p4, %s670_s12), 1 }
   0xf   : > { %s551_s16 = sshll.u32 %s838_s12, 7  ;;  %s552_s24 = sshll.u32 %s838_s12, 4 }
  0x10   : > { %s724_s19 = scalar_lea.vmem %s829_s0, %s551_s16  ;;  %s206_s27 = scalar_lea.vmem %s832_s3, %s552_s24 }
  0x11   : > { %v624_v1 = vld [vmem:[%s724_s19 + $0x40] sm:$0xff]   ;;  %v625_v3 = vld [vmem:[%s724_s19 + $0x48] sm:$0xff]   ;;  %v626_v24 = vld [vmem:[%s724_s19 + $0x50] sm:$0xff]  }
  0x12   : > { %v554_v2 = vld [vmem:[%s724_s19] sm:$0xff]   ;;  %v587_v4 = vunpack.c.l.bf16 %v624_v1  ;;  %v588_v6 = vunpack.c.h.bf16 %v624_v1  ;;  %v617_v8 = vld [vmem:[%s724_s19 + $0x8] sm:$0xff]   ;;  %v591_v10 = vunpack.c.l.bf16 %v625_v3  ;;  %v592_v18 = vunpack.c.h.bf16 %v625_v3  ;;  %v618_v25 = vld [vmem:[%s724_s19 + $0x10] sm:$0xff]  }
  0x13   : > { %v555_v5 = vunpack.c.l.bf16 %v554_v2  ;;  %v556_v7 = vunpack.c.h.bf16 %v554_v2  ;;  %v559_v11 = vunpack.c.l.bf16 %v617_v8  ;;  %v560_v19 = vunpack.c.h.bf16 %v617_v8  ;;  %v627_v44 = vld [vmem:[%s724_s19 + $0x58] sm:$0xff]   ;;  %v628_v62 = vld [vmem:[%s724_s19 + $0x60] sm:$0xff]  }
  0x14   : > { %v295_v12 = vmul.f32 %v587_v4, %v729_v0  ;;  %v296_v14 = vmul.f32 %v588_v6, %v729_v0  ;;  %v297_v16 = vmul.f32 %v591_v10, %v729_v0  ;;  %v298_v30 = vmul.f32 %v592_v18, %v729_v0  ;;  %v619_v45 = vld [vmem:[%s724_s19 + $0x18] sm:$0xff]   ;;  %v620_v63 = vld [vmem:[%s724_s19 + $0x20] sm:$0xff]   ;;  %v629_v18 = vld [vmem:[%s724_s19 + $0x68] sm:$0xff]  }
  0x15   : > { %v279_v13 = vmul.f32 %v555_v5, %v729_v0  ;;  %v280_v15 = vmul.f32 %v556_v7, %v729_v0  ;;  %v281_v17 = vmul.f32 %v559_v11, %v729_v0  ;;  %v282_v31 = vmul.f32 %v560_v19, %v729_v0  ;;  %v621_v19 = vld [vmem:[%s724_s19 + $0x28] sm:$0xff]  }
  0x16   : > { %v334_v20 = vadd.f32 %v738_v9, %v295_v12  ;;  %v335_v22 = vadd.f32 %v738_v9, %v296_v14  ;;  %v336_v28 = vadd.f32 %v738_v9, %v297_v16  ;;  %v595_v34 = vunpack.c.l.bf16 %v626_v24 }
  0x17   : > { %v318_v21 = vadd.f32 %v738_v9, %v279_v13  ;;  %v319_v23 = vadd.f32 %v738_v9, %v280_v15  ;;  %v320_v29 = vadd.f32 %v738_v9, %v281_v17  ;;  %v563_v35 = vunpack.c.l.bf16 %v618_v25 }
  0x18   : > { %v366_v26 = vmax.f32 %v334_v20, 0.0  ;;  %v367_v32 = vmax.f32 %v335_v22, 0.0  ;;  %v368_v36 = vmax.f32 %v336_v28, 0.0  ;;  %v337_v37 = vadd.f32 %v738_v9, %v298_v30 }
  0x19   : > { %v350_v27 = vmax.f32 %v318_v21, 0.0  ;;  %v351_v33 = vmax.f32 %v319_v23, 0.0  ;;  %v321_v38 = vadd.f32 %v738_v9, %v282_v31  ;;  %v596_v39 = vunpack.c.h.bf16 %v626_v24 }
  0x1a   : > { %414 = vxpose.xlu1.b32.start [1/16] (narrow) %v366_v26, 8  ;;  %v352_v40 = vmax.f32 %v320_v29, 0.0  ;;  %v299_v41 = vmul.f32 %v595_v34, %v729_v0  ;;  %v283_v42 = vmul.f32 %v563_v35, %v729_v0  ;;  %v564_v43 = vunpack.c.h.bf16 %v618_v25 }
  0x1b   : > { %382 = vxpose.xlu0.b32.start [1/16] (narrow) %v350_v27, 8  ;;  %v369_v46 = vmax.f32 %v337_v37, 0.0  ;;  %v300_v47 = vmul.f32 %v596_v39, %v729_v0  ;;  %v599_v48 = vunpack.c.l.bf16 %v627_v44  ;;  %v567_v49 = vunpack.c.l.bf16 %v619_v45  ;;  %v622_v37 = vld [vmem:[%s724_s19 + $0x30] sm:$0xff]  }
  0x1c   : > { %v353_v50 = vmax.f32 %v321_v38, 0.0  ;;  %v338_v51 = vadd.f32 %v738_v9, %v299_v41  ;;  %v322_v52 = vadd.f32 %v738_v9, %v283_v42  ;;  %v284_v53 = vmul.f32 %v564_v43, %v729_v0 }
  0x1d   : > { %v301_v54 = vmul.f32 %v599_v48, %v729_v0  ;;  %v285_v55 = vmul.f32 %v567_v49, %v729_v0  ;;  %v600_v56 = vunpack.c.h.bf16 %v627_v44  ;;  %v568_v57 = vunpack.c.h.bf16 %v619_v45 }
  0x1e   : > { %415 = vxpose.xlu1.b32.cont [2/16] (narrow) %v367_v32, 8  ;;  %v370_v58 = vmax.f32 %v338_v51, 0.0  ;;  %v354_v59 = vmax.f32 %v322_v52, 0.0  ;;  %v339_v60 = vadd.f32 %v738_v9, %v300_v47  ;;  %v323_v61 = vadd.f32 %v738_v9, %v284_v53 }
  0x1f   : > { %383 = vxpose.xlu0.b32.cont [2/16] (narrow) %v351_v33, 8  ;;  %v340_v1 = vadd.f32 %v738_v9, %v301_v54  ;;  %v302_v2 = vmul.f32 %v600_v56, %v729_v0  ;;  %v286_v3 = vmul.f32 %v568_v57, %v729_v0  ;;  %v603_v4 = vunpack.c.l.bf16 %v628_v62  ;;  %v631_v54 = vld [vmem:[%s724_s19 + $0x78] sm:$0xff]  }
  0x20   : > { %v371_v5 = vmax.f32 %v339_v60, 0.0  ;;  %v355_v6 = vmax.f32 %v323_v61, 0.0  ;;  %v324_v7 = vadd.f32 %v738_v9, %v285_v55  ;;  %v571_v8 = vunpack.c.l.bf16 %v620_v63  ;;  %v623_v55 = vld [vmem:[%s724_s19 + $0x38] sm:$0xff]  }
  0x21   : > { %v372_v10 = vmax.f32 %v340_v1, 0.0  ;;  %v341_v11 = vadd.f32 %v738_v9, %v302_v2  ;;  %v325_v12 = vadd.f32 %v738_v9, %v286_v3  ;;  %v303_v13 = vmul.f32 %v603_v4, %v729_v0 }
  0x22   : > { %416 = vxpose.xlu1.b32.cont [3/16] (narrow) %v368_v36, 8  ;;  %v356_v14 = vmax.f32 %v324_v7, 0.0  ;;  %v287_v15 = vmul.f32 %v571_v8, %v729_v0  ;;  %v604_v16 = vunpack.c.h.bf16 %v628_v62  ;;  %v572_v17 = vunpack.c.h.bf16 %v620_v63  ;;  %v630_v36 = vld [vmem:[%s724_s19 + $0x70] sm:$0xff]  }
  0x23   : > { %384 = vxpose.xlu0.b32.cont [3/16] (narrow) %v352_v40, 8  ;;  %v373_v20 = vmax.f32 %v341_v11, 0.0  ;;  %v342_v21 = vadd.f32 %v738_v9, %v303_v13  ;;  %v607_v22 = vunpack.c.l.bf16 %v629_v18  ;;  %v575_v23 = vunpack.c.l.bf16 %v621_v19 }
  0x24   : > { %v357_v24 = vmax.f32 %v325_v12, 0.0  ;;  %v326_v25 = vadd.f32 %v738_v9, %v287_v15  ;;  %v304_v26 = vmul.f32 %v604_v16, %v729_v0  ;;  %v288_v27 = vmul.f32 %v572_v17, %v729_v0 }
  0x25   : > { %v305_v28 = vmul.f32 %v607_v22, %v729_v0  ;;  %v289_v29 = vmul.f32 %v575_v23, %v729_v0  ;;  %v608_v30 = vunpack.c.h.bf16 %v629_v18  ;;  %v576_v31 = vunpack.c.h.bf16 %v621_v19 }
  0x26   : > { %417 = vxpose.xlu1.b32.cont [4/16] (narrow) %v369_v46, 8  ;;  %v374_v32 = vmax.f32 %v342_v21, 0.0  ;;  %v358_v33 = vmax.f32 %v326_v25, 0.0  ;;  %v343_v34 = vadd.f32 %v738_v9, %v304_v26  ;;  %v327_v35 = vadd.f32 %v738_v9, %v288_v27 }
  0x27   : > { %385 = vxpose.xlu0.b32.cont [4/16] (narrow) %v353_v50, 8  ;;  %v344_v38 = vadd.f32 %v738_v9, %v305_v28  ;;  %v306_v39 = vmul.f32 %v608_v30, %v729_v0  ;;  %v290_v40 = vmul.f32 %v576_v31, %v729_v0  ;;  %v611_v41 = vunpack.c.l.bf16 %v630_v36 }
  0x28   : > { %v375_v42 = vmax.f32 %v343_v34, 0.0  ;;  %v359_v43 = vmax.f32 %v327_v35, 0.0  ;;  %v328_v44 = vadd.f32 %v738_v9, %v289_v29  ;;  %v579_v45 = vunpack.c.l.bf16 %v622_v37 }
  0x29   : > { %v376_v46 = vmax.f32 %v344_v38, 0.0  ;;  %v345_v47 = vadd.f32 %v738_v9, %v306_v39  ;;  %v329_v48 = vadd.f32 %v738_v9, %v290_v40  ;;  %v307_v49 = vmul.f32 %v611_v41, %v729_v0 }
  0x2a   : > { %418 = vxpose.xlu1.b32.cont [5/16] (narrow) %v370_v58, 8  ;;  %v360_v50 = vmax.f32 %v328_v44, 0.0  ;;  %v291_v51 = vmul.f32 %v579_v45, %v729_v0  ;;  %v612_v52 = vunpack.c.h.bf16 %v630_v36  ;;  %v580_v53 = vunpack.c.h.bf16 %v622_v37 }
  0x2b   : > { %386 = vxpose.xlu0.b32.cont [5/16] (narrow) %v354_v59, 8  ;;  %v377_v56 = vmax.f32 %v345_v47, 0.0  ;;  %v346_v57 = vadd.f32 %v738_v9, %v307_v49  ;;  %v615_v58 = vunpack.c.l.bf16 %v631_v54  ;;  %v583_v59 = vunpack.c.l.bf16 %v623_v55 }
  0x2c   : > { %v361_v60 = vmax.f32 %v329_v48, 0.0  ;;  %v330_v61 = vadd.f32 %v738_v9, %v291_v51  ;;  %v308_v62 = vmul.f32 %v612_v52, %v729_v0  ;;  %v292_v63 = vmul.f32 %v580_v53, %v729_v0 }
  0x2d   : > { %v309_v1 = vmul.f32 %v615_v58, %v729_v0  ;;  %v293_v2 = vmul.f32 %v583_v59, %v729_v0  ;;  %v616_v3 = vunpack.c.h.bf16 %v631_v54  ;;  %v584_v4 = vunpack.c.h.bf16 %v623_v55 }
  0x2e   : > { %419 = vxpose.xlu1.b32.cont [6/16] (narrow) %v371_v5, 8  ;;  %v378_v5 = vmax.f32 %v346_v57, 0.0  ;;  %v347_v7 = vadd.f32 %v738_v9, %v308_v62  ;;  %v331_v8 = vadd.f32 %v738_v9, %v292_v63 }
  0x2f   : > { %387 = vxpose.xlu0.b32.cont [6/16] (narrow) %v355_v6, 8  ;;  %v362_v6 = vmax.f32 %v330_v61, 0.0  ;;  %v294_v11 = vmul.f32 %v584_v4, %v729_v0  ;;  %v332_v15 = vadd.f32 %v738_v9, %v293_v2 }
  0x30   : > { %v379_v12 = vmax.f32 %v347_v7, 0.0  ;;  %v363_v13 = vmax.f32 %v331_v8, 0.0 }
  0x31   : > { %v364_v17 = vmax.f32 %v332_v15, 0.0  ;;  %v333_v19 = vadd.f32 %v738_v9, %v294_v11 }
  0x32   : > { %420 = vxpose.xlu1.b32.cont [7/16] (narrow) %v372_v10, 8  ;;  %v310_v10 = vmul.f32 %v616_v3, %v729_v0 }
  0x33   : > { %388 = vxpose.xlu0.b32.cont [7/16] (narrow) %v356_v14, 8  ;;  %v348_v14 = vadd.f32 %v738_v9, %v309_v1 }
  0x34   : > { %v349_v18 = vadd.f32 %v738_v9, %v310_v10 }
  0x35   : > { %v380_v16 = vmax.f32 %v348_v14, 0.0 }
  0x36   : > { %421 = vxpose.xlu1.b32.cont [8/16] (narrow) %v373_v20, 8  ;;  %v381_v0 = vmax.f32 %v349_v18, 0.0  ;;  %v365_v20 = vmax.f32 %v333_v19, 0.0 }
  0x37   : > { %389 = vxpose.xlu0.b32.cont [8/16] (narrow) %v357_v24, 8 }
  0x3a   : > { %422 = vxpose.xlu1.b32.cont [9/16] (narrow) %v374_v32, 8 }
  0x3b   : > { %390 = vxpose.xlu0.b32.cont [9/16] (narrow) %v358_v33, 8 }
  0x3e   : > { %423 = vxpose.xlu1.b32.cont [10/16] (narrow) %v375_v42, 8 }
  0x3f   : > { %391 = vxpose.xlu0.b32.cont [10/16] (narrow) %v359_v43, 8 }
  0x42   : > { %424 = vxpose.xlu1.b32.cont [11/16] (narrow) %v376_v46, 8 }
  0x43   : > { %392 = vxpose.xlu0.b32.cont [11/16] (narrow) %v360_v50, 8 }
  0x46   : > { %425 = vxpose.xlu1.b32.cont [12/16] (narrow) %v377_v56, 8 }
  0x47   : > { %393 = vxpose.xlu0.b32.cont [12/16] (narrow) %v361_v60, 8 }
  0x4a   : > { %426 = vxpose.xlu1.b32.cont [13/16] (narrow) %v378_v5, 8 }
  0x4b   : > { %394 = vxpose.xlu0.b32.cont [13/16] (narrow) %v362_v6, 8 }
  0x4e   : > { %427 = vxpose.xlu1.b32.cont [14/16] (narrow) %v379_v12, 8 }
  0x4f   : > { %395 = vxpose.xlu0.b32.cont [14/16] (narrow) %v363_v13, 8 }
  0x52   : > { %428 = vxpose.xlu1.b32.cont [15/16] (narrow) %v380_v16, 8 }
  0x53   : > { %396 = vxpose.xlu0.b32.cont [15/16] (narrow) %v364_v17, 8 }
  0x56   : > { %429 = vxpose.xlu1.b32.end [16/16] (narrow) %v381_v0, 8 }
  0x57   : > { %397 = vxpose.xlu0.b32.end [16/16] (narrow) %v365_v20, 8 }
  0x9a   : > { %v430_v21 = vpop.trf.xlu1 }
  0x9b   : > { %v398_v22 = vpop.trf.xlu0  ;;  %447 = vst [vmem:[%s206_s27 + $0x8] sm:$0xff] %v430_v21 }
  0x9c   : > { %446 = vst [vmem:[%s206_s27] sm:$0xff] %v398_v22 }
  0x9d PF: > { %s13_s14 = sadd.s32 1, %s678_s14   ;;  %s833_s12 = smov %s674_s13 }
  0x9e   : > { %p10_p5 = scmp.ge.s32.totalorder %s13_s14, 4   ;;  %s834_s13 = smov %s836_s15 }
  0xa0   :  { %12 = sbr.rel (!%p10_p5) target bundleno = 2 (0x2), region = 62 }

// kernel: basic_conv2d.2
= control target key start
LH: loop header
LB: loop body
LE: loop exit
PB: predicated region body
PF: predicated region fallthrough
CT: control target
= control target key end

     0   :  { %s2338_s12 = smov 0   ;;  %s2340_s13 = smov 0   ;;  %s2523_s0 = inlined_call_operand.vmem [shape: bf16[2,18,16,12], index: 0, kind: input, shape index: {}]   ;;  %s2524_s1 = inlined_call_operand.vmem [shape: bf16[3,12,128], index: 1, kind: input, shape index: {}]   ;;  %s2525_s2 = inlined_call_operand.vmem [shape: bf16[2,1,256,128], index: 2, kind: output, shape index: {0}]   ;;  %s2526_s3 = inlined_call_operand.vmem [shape: f32[2,1,2,128], index: 3, kind: output, shape index: {1}]  }
   0x1   :  { %s2342_s14 = smov 0  }
   0x2 LB: > { %s26_s15 = sadd.s32 1, %s2312_s13  ;;  %p1661_p0 = scmp.ge.s32.totalorder %s2316_s14, 1  ;;  %s2316_s14 = sphi %s2342_s14, %s14_s14   ;;  %s2312_s13 = sphi %s2340_s13, %s2528_s13   ;;  %s2308_s12 = sphi %s2338_s12, %s2527_s12  }
   0x3   : > { %p28_p1 = scmp.ge.s32.totalorder %s26_s15, 2  ;;  %p156_p2 = scmp.lt.s32.totalorder %s2316_s14, 3 }
   0x5   : > { %s2530_s15 = smov (%p28_p1, %s26_s15), 0  ;;  %p157_p3 = pnand %p1661_p0, %p156_p2 }
   0x6   : > { %v2243_v0 = vld [vmem:[%s2524_s1 + $0x8] sm:$0x3f] (!%p157_p3)   ;;  %vm424_vm0 = vcmask (!%p157_p3), 1045504   ;;  %p191_p4 = scmp.lt.s32.totalorder (!%p157_p3), %s2308_s12, 1  ;;  %v2244_v1 = vld [vmem:[%s2524_s1] sm:$0x3f] (!%p157_p3)  }
   0x7   : > { %160 = sbr.rel (%p157_p3) target bundleno = 347 (0x15b), region = 28  ;;  %2214 = vmatprep.subr.msk.bf16.mxu1 (!%p157_p3), %vm424_vm0, %v2243_v0  ;;  %v426_v2 = vsel (!%p157_p3), %vm424_vm0, %v2243_v0, 0  ;;  %v2247_v3 = vld [vmem:[%s2524_s1 + $0x10] sm:$0x3f] (!%p157_p3)   ;;  %2215 = vmatprep.subr.msk.bf16.mxu0 (!%p157_p3), %vm424_vm0, %v2244_v1  ;;  %v723_v4 = vsel (!%p157_p3), %vm424_vm0, %v2244_v1, 0  ;;  %vm375_vm1 = vcmask (!%p157_p3), 97280  }
   0x8   : > { %2047 = vmatpush3.bf16.msra.mxu1 (!%p157_p3), %v426_v2  ;;  %2081 = vmatpush3.bf16.msra.mxu0 (!%p157_p3), %v723_v4  ;;  %v1059_v9 = vsel (!%p157_p3), %vm424_vm0, %v2247_v3, 0  ;;  %vm1520_vm2 = vcmask (!%p157_p3), 1040384  }
   0x9   : > { %2216 = vmatprep.subr.msk.bf16.mxu1 (!%p157_p3), %vm424_vm0, %v2244_v1  ;;  %2217 = vmatprep.subr.msk.bf16.mxu0 (!%p157_p3), %vm424_vm0, %v2247_v3 }
   0xe   : > { %s2532_s12 = smov (!%p191_p4, %s2308_s12), 1 }
   0xf   : > { %s2218_s22 = smul.u32 144, %s2532_s12  ;;  %s1867_s26 = sshll.u32 %s2532_s12, 7 }
  0x10   : > { %s2488_s29 = scalar_lea.vmem %s2525_s2, %s1867_s26  ;;  %s1665_s30 = sshll.u32 %s2532_s12, 1 }
  0x11   : > { %s2377_s25 = scalar_lea.vmem %s2523_s0, %s2218_s22  ;;  %s211_s6 = scalar_lea.vmem %s2526_s3, %s1665_s30 }
  0x12   : > { %v2245_v5 = vld [vmem:[%s2377_s25 + $0x8] sm:$0xff]   ;;  %v2246_v6 = vld [vmem:[%s2377_s25] sm:$0xff]   ;;  %v2248_v7 = vld [vmem:[%s2377_s25 + $0x10] sm:$0xff]  }
  0x13   : > { %2048 = vmatprep.mubr.msk.bf16.mxu1 %vm375_vm1, %v2245_v5  ;;  %2082 = vmatprep.mubr.msk.bf16.mxu0 %vm375_vm1, %v2246_v6  ;;  %v2249_v8 = vld [vmem:[%s2377_s25 + $0x8] sm:$0xff]   ;;  %v2250_v10 = vld [vmem:[%s2377_s25 + $0x18] sm:$0xff]   ;;  %v2251_v11 = vld [vmem:[%s2377_s25 + $0x10] sm:$0xff]  }
  0x14   : > { %2049 = vmatmul.mubr.msk.bf16.vlgmr.msra.gmra.mrb[0].mxu1 %vm375_vm1, %v2248_v7  ;;  %2083 = vmatmul.mubr.msk.bf16.vlgmr.msra.gmra.mrb[0].mxu0 %vm375_vm1, %v2249_v8  ;;  %v2252_v12 = vld [vmem:[%s2377_s25 + $0x20] sm:$0xff]   ;;  %v2253_v13 = vld [vmem:[%s2377_s25 + $0x18] sm:$0xff]   ;;  %v2254_v14 = vld [vmem:[%s2377_s25 + $0x28] sm:$0xff]  }
  0x15   : > { %2149 = vmatpush3.bf16.msra.mxu1 %v723_v4  ;;  %2115 = vmatpush3.bf16.msra.mxu0 %v1059_v9  ;;  %v2255_v15 = vld [vmem:[%s2377_s25 + $0x20] sm:$0xff]   ;;  %v2256_v16 = vld [vmem:[%s2377_s25 + $0x30] sm:$0xff]   ;;  %v2257_v17 = vld [vmem:[%s2377_s25 + $0x28] sm:$0xff]  }
  0x16   : > { %2052 = vmatprep.mubr.msk.bf16.mxu1 %vm375_vm1, %v2250_v10  ;;  %2086 = vmatprep.mubr.msk.bf16.mxu0 %vm375_vm1, %v2251_v11  ;;  %v2258_v18 = vld [vmem:[%s2377_s25 + $0x38] sm:$0xff]   ;;  %v2259_v19 = vld [vmem:[%s2377_s25 + $0x30] sm:$0xff]   ;;  %v2260_v20 = vld [vmem:[%s2377_s25 + $0x40] sm:$0xff]  }
  0x17   : > { %v2261_v21 = vld [vmem:[%s2377_s25 + $0x38] sm:$0xff]   ;;  %v2262_v22 = vld [vmem:[%s2377_s25 + $0x48] sm:$0xff]   ;;  %v2263_v23 = vld [vmem:[%s2377_s25 + $0x10] sm:$0xff]  }
  0x18   : > { %v2264_v24 = vld [vmem:[%s2377_s25 + $0x50] sm:$0xff]   ;;  %v2265_v25 = vld [vmem:[%s2377_s25 + $0x18] sm:$0xff]   ;;  %v2267_v27 = vld [vmem:[%s2377_s25 + $0x20] sm:$0xff]  }
  0x19   : > { %v2266_v26 = vld [vmem:[%s2377_s25 + $0x58] sm:$0xff]   ;;  %v2268_v28 = vld [vmem:[%s2377_s25 + $0x60] sm:$0xff]   ;;  %v2269_v29 = vld [vmem:[%s2377_s25 + $0x28] sm:$0xff]  }
  0x1a   : > { %v2270_v30 = vld [vmem:[%s2377_s25 + $0x68] sm:$0xff]   ;;  %v2271_v31 = vld [vmem:[%s2377_s25 + $0x30] sm:$0xff]   ;;  %v2273_v33 = vld [vmem:[%s2377_s25 + $0x38] sm:$0xff]  }
  0x1b   : > { %v2272_v32 = vld [vmem:[%s2377_s25 + $0x70] sm:$0xff]   ;;  %v2274_v34 = vld [vmem:[%s2377_s25 + $0x78] sm:$0xff]   ;;  %v2275_v35 = vld [vmem:[%s2377_s25 + $0x40] sm:$0xff]  }
  0x1c   : > { %2053 = vmatmul.mubr.msk.bf16.gmra.mrb[4].mxu1 %vm375_vm1, %v2252_v12  ;;  %2087 = vmatmul.mubr.msk.bf16.gmra.mrb[4].mxu0 %vm375_vm1, %v2253_v13  ;;  %v2276_v36 = vld [vmem:[%s2377_s25 + $0x80] sm:$0xff]   ;;  %v2277_v37 = vld [vmem:[%s2377_s25 + $0x48] sm:$0xff]   ;;  %v2279_v39 = vld [vmem:[%s2377_s25 + $0x50] sm:$0xff]  }
  0x1d   : > { %2056 = vmatprep.mubr.msk.bf16.mxu1 %vm375_vm1, %v2254_v14  ;;  %2090 = vmatprep.mubr.msk.bf16.mxu0 %vm375_vm1, %v2255_v15  ;;  %v2278_v38 = vld [vmem:[%s2377_s25 + $0x40] sm:$0xff]   ;;  %v2280_v40 = vld [vmem:[%s2377_s25 + $0x48] sm:$0xff]   ;;  %v2281_v41 = vld [vmem:[%s2377_s25 + $0x58] sm:$0xff]  }
  0x1e   : > { %v2282_v42 = vld [vmem:[%s2377_s25 + $0x50] sm:$0xff]   ;;  %v2283_v43 = vld [vmem:[%s2377_s25 + $0x60] sm:$0xff]   ;;  %v2284_v44 = vld [vmem:[%s2377_s25 + $0x58] sm:$0xff]  }
  0x1f   : > { %v2285_v45 = vld [vmem:[%s2377_s25 + $0x68] sm:$0xff]   ;;  %v2286_v46 = vld [vmem:[%s2377_s25 + $0x60] sm:$0xff]   ;;  %v2287_v47 = vld [vmem:[%s2377_s25 + $0x70] sm:$0xff]  }
  0x20   : > { %v2288_v48 = vld [vmem:[%s2377_s25 + $0x68] sm:$0xff]   ;;  %v2289_v49 = vld [vmem:[%s2377_s25 + $0x78] sm:$0xff]   ;;  %v2290_v50 = vld [vmem:[%s2377_s25 + $0x70] sm:$0xff]  }
  0x21   : > { %v2291_v51 = vld [vmem:[%s2377_s25 + $0x80] sm:$0xff]   ;;  %v2292_v52 = vld [vmem:[%s2377_s25 + $0x78] sm:$0xff]   ;;  %v2293_v53 = vld [vmem:[%s2377_s25 + $0x88] sm:$0xff]  }
  0x24   : > { %2057 = vmatmul.mubr.msk.bf16.gmra.mrb[8].mxu1 %vm375_vm1, %v2256_v16  ;;  %2091 = vmatmul.mubr.msk.bf16.gmra.mrb[8].mxu0 %vm375_vm1, %v2257_v17 }
  0x25   : > { %2060 = vmatprep.mubr.msk.bf16.mxu1 %vm375_vm1, %v2258_v18  ;;  %2094 = vmatprep.mubr.msk.bf16.mxu0 %vm375_vm1, %v2259_v19 }
  0x2c   : > { %2061 = vmatmul.mubr.msk.bf16.gmra.mrb[12].mxu1 %vm375_vm1, %v2260_v20  ;;  %2095 = vmatmul.mubr.msk.bf16.gmra.mrb[12].mxu0 %vm375_vm1, %v2261_v21 }
  0x2d   : > { %2064 = vmatprep.mubr.msk.bf16.mxu1 %vm375_vm1, %v2262_v22  ;;  %2116 = vmatprep.mubr.msk.bf16.mxu0 %vm375_vm1, %v2263_v23 }
  0x34   : > { %2065 = vmatmul.mubr.msk.bf16.gmra.mrb[16].mxu1 %vm375_vm1, %v2264_v24  ;;  %2117 = vmatmul.mubr.msk.bf16.vlgmr.msra.gmra.mrb[0].mxu0 %vm375_vm1, %v2265_v25 }
  0x35   : > { %2068 = vmatprep.mubr.msk.bf16.mxu1 %vm375_vm1, %v2266_v26  ;;  %2120 = vmatprep.mubr.msk.bf16.mxu0 %vm375_vm1, %v2267_v27 }
  0x3c   : > { %2069 = vmatmul.mubr.msk.bf16.gmra.mrb[20].mxu1 %vm375_vm1, %v2268_v28  ;;  %2121 = vmatmul.mubr.msk.bf16.gmra.mrb[4].mxu0 %vm375_vm1, %v2269_v29 }
  0x3d   : > { %2072 = vmatprep.mubr.msk.bf16.mxu1 %vm375_vm1, %v2270_v30  ;;  %2124 = vmatprep.mubr.msk.bf16.mxu0 %vm375_vm1, %v2271_v31 }
  0x44   : > { %2073 = vmatmul.mubr.msk.bf16.gmra.mrb[24].mxu1 %vm375_vm1, %v2272_v32  ;;  %2125 = vmatmul.mubr.msk.bf16.gmra.mrb[8].mxu0 %vm375_vm1, %v2273_v33 }
  0x45   : > { %2076 = vmatprep.mubr.msk.bf16.mxu1 %vm375_vm1, %v2274_v34  ;;  %2128 = vmatprep.mubr.msk.bf16.mxu0 %vm375_vm1, %v2275_v35 }
  0x4c   : > { %2077 = vmatmul.mubr.msk.bf16.gmra.mrb[28].mxu1 %vm375_vm1, %v2276_v36  ;;  %2129 = vmatmul.mubr.msk.bf16.gmra.mrb[12].mxu0 %vm375_vm1, %v2277_v37 }
  0x4d   : > { %2098 = vmatprep.mubr.msk.bf16.mxu1 %vm375_vm1, %v2278_v38  ;;  %2132 = vmatprep.mubr.msk.bf16.mxu0 %vm375_vm1, %v2279_v39 }
  0x54   : > { %2099 = vmatmul.mubr.msk.bf16.vlgmr.msra.gmra.mrb[16].mxu1 %vm375_vm1, %v2280_v40  ;;  %2133 = vmatmul.mubr.msk.bf16.gmra.mrb[16].mxu0 %vm375_vm1, %v2281_v41 }
  0x55   : > { %2102 = vmatprep.mubr.msk.bf16.mxu1 %vm375_vm1, %v2282_v42  ;;  %2136 = vmatprep.mubr.msk.bf16.mxu0 %vm375_vm1, %v2283_v43 }
  0x5c   : > { %2103 = vmatmul.mubr.msk.bf16.gmra.mrb[20].mxu1 %vm375_vm1, %v2284_v44  ;;  %2137 = vmatmul.mubr.msk.bf16.gmra.mrb[20].mxu0 %vm375_vm1, %v2285_v45 }
  0x5d   : > { %2106 = vmatprep.mubr.msk.bf16.mxu1 %vm375_vm1, %v2286_v46  ;;  %2140 = vmatprep.mubr.msk.bf16.mxu0 %vm375_vm1, %v2287_v47 }
  0x64   : > { %2107 = vmatmul.mubr.msk.bf16.gmra.mrb[24].mxu1 %vm375_vm1, %v2288_v48  ;;  %2141 = vmatmul.mubr.msk.bf16.gmra.mrb[24].mxu0 %vm375_vm1, %v2289_v49 }
  0x65   : > { %2110 = vmatprep.mubr.msk.bf16.mxu1 %vm375_vm1, %v2290_v50  ;;  %2144 = vmatprep.mubr.msk.bf16.mxu0 %vm375_vm1, %v2291_v51 }
  0x6c   : > { %2111 = vmatmul.mubr.msk.bf16.gmra.mrb[28].mxu1 %vm375_vm1, %v2292_v52  ;;  %2145 = vmatmul.mubr.msk.bf16.gmra.mrb[28].mxu0 %vm375_vm1, %v2293_v53 }
  0xe7   : > { %v2050_v54 = vpop.f32.mrb[0].mxu1 }
  0xe8   : > { %v462_v55 = vpop.f32.mrb[1].mxu1 }
  0xe9   : > { %v2051_v56 = vpop.f32.mrb[2].mxu1 }
  0xea   : > { %v465_v57 = vpop.f32.mrb[3].mxu1 }
  0xef   : > { %v2054_v58 = vpop.f32.mrb[4].mxu1 }
  0xf0   : > { %v478_v59 = vpop.f32.mrb[5].mxu1 }
  0xf1   : > { %v2055_v60 = vpop.f32.mrb[6].mxu1 }
  0xf2   : > { %v481_v61 = vpop.f32.mrb[7].mxu1 }
  0xf7   : > { %v2058_v62 = vpop.f32.mrb[8].mxu1 }
  0xf8   : > { %v494_v63 = vpop.f32.mrb[9].mxu1 }
  0xf9   : > { %v2059_v0 = vpop.f32.mrb[10].mxu1 }
  0xfa   : > { %v497_v1 = vpop.f32.mrb[11].mxu1 }
  0xff   : > { %v2476_v2 = vpop.f32.mrb[12].mxu1 }
 0x100   : > { %v2478_v3 = vpop.f32.mrb[13].mxu1 }
 0x101   : > { %v2480_v4 = vpop.f32.mrb[14].mxu1 }
 0x102   : > { %v2482_v5 = vpop.f32.mrb[15].mxu1 }
 0x107   : > { %v2118_v6 = vpop.f32.mrb[0].mxu0 }
 0x108   : > { %v2150_v7 = vadd.f32 %v2118_v6, %v2050_v54  ;;  %v1095_v8 = vpop.f32.mrb[1].mxu0 }
 0x109   : > { %v2151_v9 = vadd.f32 %v1095_v8, %v462_v55  ;;  %v2119_v10 = vpop.f32.mrb[2].mxu0 }
 0x10a   : > { %v2152_v11 = vadd.f32 %v2119_v10, %v2051_v56  ;;  %v1098_v12 = vpop.f32.mrb[3].mxu0  ;;  %v1453_v19 = vmul.f32 %v2150_v7, %v2150_v7 }
 0x10b   : > { %v2153_v13 = vadd.f32 %v1098_v12, %v465_v57  ;;  %v1451_v15 = vmul.f32 %v2151_v9, %v2151_v9 }
 0x10c   : > { %v1908_v14 = vpack.c.bf16 %v2152_v11, %v2150_v7  ;;  %v1454_v25 = vmul.f32 %v2152_v11, %v2152_v11 }
 0x10d   : > { %v1903_v16 = vpack.c.bf16 %v2153_v13, %v2151_v9  ;;  %v1414_v17 = vadd.f32 %v2153_v13, %v2151_v9  ;;  %v1452_v18 = vmul.f32 %v2153_v13, %v2153_v13 }
 0x10e   : > { %1980 = vst [vmem:[%s2488_s29 + $0x8] sm:$0xff] %v1908_v14  }
 0x10f   : > { %1904 = vst [vmem:[%s2488_s29] sm:$0xff] %v1903_v16   ;;  %v1415_v20 = vadd.f32 %v2150_v7, %v1414_v17  ;;  %v1483_v21 = vadd.f32 %v1452_v18, %v1451_v15  ;;  %v2122_v22 = vpop.f32.mrb[4].mxu0 }
 0x110   : > { %v2154_v23 = vadd.f32 %v2122_v22, %v2054_v58  ;;  %v1111_v24 = vpop.f32.mrb[5].mxu0 }
 0x111   : > { %v1484_v26 = vadd.f32 %v1483_v21, %v1453_v19  ;;  %v2155_v27 = vadd.f32 %v1111_v24, %v478_v59  ;;  %v1416_v28 = vadd.f32 %v2152_v11, %v1415_v20  ;;  %v2123_v29 = vpop.f32.mrb[6].mxu0 }
 0x112   : > { %v2156_v30 = vadd.f32 %v2123_v29, %v2055_v60  ;;  %v1114_v31 = vpop.f32.mrb[7].mxu0  ;;  %v1457_v41 = vmul.f32 %v2154_v23, %v2154_v23 }
 0x113   : > { %v1417_v32 = vadd.f32 %v2155_v27, %v1416_v28  ;;  %v1455_v33 = vmul.f32 %v2155_v27, %v2155_v27  ;;  %v1485_v34 = vadd.f32 %v1484_v26, %v1454_v25  ;;  %v2157_v35 = vadd.f32 %v1114_v31, %v481_v61 }
 0x114   : > { %v1918_v36 = vpack.c.bf16 %v2156_v30, %v2154_v23  ;;  %v1458_v47 = vmul.f32 %v2156_v30, %v2156_v30 }
 0x115   : > { %v1486_v37 = vadd.f32 %v1485_v34, %v1455_v33  ;;  %v1913_v38 = vpack.c.bf16 %v2157_v35, %v2155_v27  ;;  %v1418_v39 = vadd.f32 %v2157_v35, %v1417_v32  ;;  %v1456_v40 = vmul.f32 %v2157_v35, %v2157_v35 }
 0x116   : > { %1982 = vst [vmem:[%s2488_s29 + $0x18] sm:$0xff] %v1918_v36  }
 0x117   : > { %1981 = vst [vmem:[%s2488_s29 + $0x10] sm:$0xff] %v1913_v38   ;;  %v1419_v42 = vadd.f32 %v2154_v23, %v1418_v39  ;;  %v1487_v43 = vadd.f32 %v1486_v37, %v1456_v40  ;;  %v2126_v44 = vpop.f32.mrb[8].mxu0 }
 0x118   : > { %v2158_v45 = vadd.f32 %v2126_v44, %v2058_v62  ;;  %v1127_v46 = vpop.f32.mrb[9].mxu0 }
 0x119   : > { %v1488_v48 = vadd.f32 %v1487_v43, %v1457_v41  ;;  %v2159_v49 = vadd.f32 %v1127_v46, %v494_v63  ;;  %v1420_v50 = vadd.f32 %v2156_v30, %v1419_v42  ;;  %v2127_v51 = vpop.f32.mrb[10].mxu0 }
 0x11a   : > { %v2160_v52 = vadd.f32 %v2127_v51, %v2059_v0  ;;  %v1130_v53 = vpop.f32.mrb[11].mxu0  ;;  %v1461_v62 = vmul.f32 %v2158_v45, %v2158_v45 }
 0x11b   : > { %v1421_v54 = vadd.f32 %v2159_v49, %v1420_v50  ;;  %v1459_v55 = vmul.f32 %v2159_v49, %v2159_v49  ;;  %v1489_v56 = vadd.f32 %v1488_v48, %v1458_v47  ;;  %v2161_v57 = vadd.f32 %v1130_v53, %v497_v1 }
 0x11c   : > { %v1928_v58 = vpack.c.bf16 %v2160_v52, %v2158_v45  ;;  %v1462_v0 = vmul.f32 %v2160_v52, %v2160_v52 }
 0x11d   : > { %v1490_v59 = vadd.f32 %v1489_v56, %v1459_v55  ;;  %v1923_v60 = vpack.c.bf16 %v2161_v57, %v2159_v49  ;;  %v1422_v61 = vadd.f32 %v2161_v57, %v1421_v54  ;;  %v1460_v6 = vmul.f32 %v2161_v57, %v2161_v57 }
 0x11e   : > { %1984 = vst [vmem:[%s2488_s29 + $0x28] sm:$0xff] %v1928_v58  }
 0x11f   : > { %1983 = vst [vmem:[%s2488_s29 + $0x20] sm:$0xff] %v1923_v60   ;;  %v1423_v7 = vadd.f32 %v2158_v45, %v1422_v61  ;;  %v1491_v8 = vadd.f32 %v1490_v59, %v1460_v6  ;;  %v2130_v63 = vpop.f32.mrb[12].mxu0 }
 0x120   : > { %v2162_v9 = vadd.f32 %v2130_v63, %v2476_v2  ;;  %v1143_v10 = vpop.f32.mrb[13].mxu0 }
 0x121   : > { %v1492_v11 = vadd.f32 %v1491_v8, %v1461_v62  ;;  %v2163_v12 = vadd.f32 %v1143_v10, %v2478_v3  ;;  %v1424_v1 = vadd.f32 %v2160_v52, %v1423_v7  ;;  %v2131_v13 = vpop.f32.mrb[14].mxu0 }
 0x122   : > { %v2164_v14 = vadd.f32 %v2131_v13, %v2480_v4  ;;  %v1146_v15 = vpop.f32.mrb[15].mxu0  ;;  %v1465_v25 = vmul.f32 %v2162_v9, %v2162_v9 }
 0x123   : > { %v1425_v16 = vadd.f32 %v2163_v12, %v1424_v1  ;;  %v1463_v17 = vmul.f32 %v2163_v12, %v2163_v12  ;;  %v1493_v18 = vadd.f32 %v1492_v11, %v1462_v0  ;;  %v2165_v19 = vadd.f32 %v1146_v15, %v2482_v5 }
 0x124   : > { %v1938_v20 = vpack.c.bf16 %v2164_v14, %v2162_v9  ;;  %v1466_v31 = vmul.f32 %v2164_v14, %v2164_v14 }
 0x125   : > { %v1494_v21 = vadd.f32 %v1493_v18, %v1463_v17  ;;  %v1933_v2 = vpack.c.bf16 %v2165_v19, %v2163_v12  ;;  %v1426_v22 = vadd.f32 %v2165_v19, %v1425_v16  ;;  %v1464_v23 = vmul.f32 %v2165_v19, %v2165_v19 }
 0x126   : > { %1986 = vst [vmem:[%s2488_s29 + $0x38] sm:$0xff] %v1938_v20  }
 0x127   : > { %v2100_v24 = vpop.f32.mrb[16].mxu1  ;;  %1985 = vst [vmem:[%s2488_s29 + $0x30] sm:$0xff] %v1933_v2   ;;  %v1427_v3 = vadd.f32 %v2162_v9, %v1426_v22  ;;  %v1495_v26 = vadd.f32 %v1494_v21, %v1464_v23  ;;  %v2134_v27 = vpop.f32.mrb[16].mxu0 }
 0x128   : > { %v823_v28 = vpop.f32.mrb[17].mxu1  ;;  %v2166_v4 = vadd.f32 %v2134_v27, %v2100_v24  ;;  %v1159_v29 = vpop.f32.mrb[17].mxu0 }
 0x129   : > { %v2101_v30 = vpop.f32.mrb[18].mxu1  ;;  %v1496_v32 = vadd.f32 %v1495_v26, %v1465_v25  ;;  %v2167_v5 = vadd.f32 %v1159_v29, %v823_v28  ;;  %v1428_v33 = vadd.f32 %v2164_v14, %v1427_v3  ;;  %v2135_v34 = vpop.f32.mrb[18].mxu0 }
 0x12a   : > { %v826_v35 = vpop.f32.mrb[19].mxu1  ;;  %v2168_v36 = vadd.f32 %v2135_v34, %v2101_v30  ;;  %v1162_v37 = vpop.f32.mrb[19].mxu0  ;;  %v1469_v48 = vmul.f32 %v2166_v4, %v2166_v4 }
 0x12b   : > { %v1429_v38 = vadd.f32 %v2167_v5, %v1428_v33  ;;  %v1467_v39 = vmul.f32 %v2167_v5, %v2167_v5  ;;  %v1497_v40 = vadd.f32 %v1496_v32, %v1466_v31  ;;  %v2169_v41 = vadd.f32 %v1162_v37, %v826_v35 }
 0x12c   : > { %v1948_v42 = vpack.c.bf16 %v2168_v36, %v2166_v4  ;;  %v1470_v56 = vmul.f32 %v2168_v36, %v2168_v36 }
 0x12d   : > { %v1498_v43 = vadd.f32 %v1497_v40, %v1467_v39  ;;  %v1943_v44 = vpack.c.bf16 %v2169_v41, %v2167_v5  ;;  %v1430_v45 = vadd.f32 %v2169_v41, %v1429_v38  ;;  %v1468_v46 = vmul.f32 %v2169_v41, %v2169_v41 }
 0x12e   : > { %1988 = vst [vmem:[%s2488_s29 + $0x48] sm:$0xff] %v1948_v42  }
 0x12f   : > { %v2104_v47 = vpop.f32.mrb[20].mxu1  ;;  %1987 = vst [vmem:[%s2488_s29 + $0x40] sm:$0xff] %v1943_v44   ;;  %v1431_v49 = vadd.f32 %v2166_v4, %v1430_v45  ;;  %v1499_v50 = vadd.f32 %v1498_v43, %v1468_v46  ;;  %v2138_v51 = vpop.f32.mrb[20].mxu0 }
 0x130   : > { %v839_v52 = vpop.f32.mrb[21].mxu1  ;;  %v2170_v53 = vadd.f32 %v2138_v51, %v2104_v47  ;;  %v1175_v54 = vpop.f32.mrb[21].mxu0 }
 0x131   : > { %v2105_v55 = vpop.f32.mrb[22].mxu1  ;;  %v1500_v57 = vadd.f32 %v1499_v50, %v1469_v48  ;;  %v2171_v58 = vadd.f32 %v1175_v54, %v839_v52  ;;  %v1432_v59 = vadd.f32 %v2168_v36, %v1431_v49  ;;  %v2139_v60 = vpop.f32.mrb[22].mxu0 }
 0x132   : > { %v842_v61 = vpop.f32.mrb[23].mxu1  ;;  %v2172_v6 = vadd.f32 %v2139_v60, %v2105_v55  ;;  %v1178_v62 = vpop.f32.mrb[23].mxu0  ;;  %v1473_v14 = vmul.f32 %v2170_v53, %v2170_v53 }
 0x133   : > { %v1433_v7 = vadd.f32 %v2171_v58, %v1432_v59  ;;  %v1471_v8 = vmul.f32 %v2171_v58, %v2171_v58  ;;  %v1501_v63 = vadd.f32 %v1500_v57, %v1470_v56  ;;  %v2173_v9 = vadd.f32 %v1178_v62, %v842_v61 }
 0x134   : > { %v1958_v10 = vpack.c.bf16 %v2172_v6, %v2170_v53  ;;  %v1474_v2 = vmul.f32 %v2172_v6, %v2172_v6 }
 0x135   : > { %v1502_v0 = vadd.f32 %v1501_v63, %v1471_v8  ;;  %v1953_v11 = vpack.c.bf16 %v2173_v9, %v2171_v58  ;;  %v1434_v12 = vadd.f32 %v2173_v9, %v1433_v7  ;;  %v1472_v1 = vmul.f32 %v2173_v9, %v2173_v9 }
 0x136   : > { %1990 = vst [vmem:[%s2488_s29 + $0x58] sm:$0xff] %v1958_v10  }
 0x137   : > { %v2108_v13 = vpop.f32.mrb[24].mxu1  ;;  %1989 = vst [vmem:[%s2488_s29 + $0x50] sm:$0xff] %v1953_v11   ;;  %v1435_v15 = vadd.f32 %v2170_v53, %v1434_v12  ;;  %v1503_v16 = vadd.f32 %v1502_v0, %v1472_v1  ;;  %v2142_v17 = vpop.f32.mrb[24].mxu0 }
 0x138   : > { %v855_v18 = vpop.f32.mrb[25].mxu1  ;;  %v2174_v19 = vadd.f32 %v2142_v17, %v2108_v13  ;;  %v1191_v20 = vpop.f32.mrb[25].mxu0 }
 0x139   : > { %v2109_v21 = vpop.f32.mrb[26].mxu1  ;;  %v1504_v22 = vadd.f32 %v1503_v16, %v1473_v14  ;;  %v2175_v23 = vadd.f32 %v1191_v20, %v855_v18  ;;  %v1436_v24 = vadd.f32 %v2172_v6, %v1435_v15  ;;  %v2143_v25 = vpop.f32.mrb[26].mxu0 }
 0x13a   : > { %v858_v3 = vpop.f32.mrb[27].mxu1  ;;  %v2176_v26 = vadd.f32 %v2143_v25, %v2109_v21  ;;  %v1194_v27 = vpop.f32.mrb[27].mxu0  ;;  %v1477_v36 = vmul.f32 %v2174_v19, %v2174_v19 }
 0x13b   : > { %v1437_v28 = vadd.f32 %v2175_v23, %v1436_v24  ;;  %v1475_v4 = vmul.f32 %v2175_v23, %v2175_v23  ;;  %v1505_v29 = vadd.f32 %v1504_v22, %v1474_v2  ;;  %v2177_v30 = vadd.f32 %v1194_v27, %v858_v3 }
 0x13c   : > { %v1968_v31 = vpack.c.bf16 %v2176_v26, %v2174_v19  ;;  %v1478_v44 = vmul.f32 %v2176_v26, %v2176_v26 }
 0x13d   : > { %v1506_v32 = vadd.f32 %v1505_v29, %v1475_v4  ;;  %v1963_v5 = vpack.c.bf16 %v2177_v30, %v2175_v23  ;;  %v1438_v33 = vadd.f32 %v2177_v30, %v1437_v28  ;;  %v1476_v34 = vmul.f32 %v2177_v30, %v2177_v30 }
 0x13e   : > { %1992 = vst [vmem:[%s2488_s29 + $0x68] sm:$0xff] %v1968_v31  }
 0x13f   : > { %v2112_v35 = vpop.f32.mrb[28].mxu1  ;;  %1991 = vst [vmem:[%s2488_s29 + $0x60] sm:$0xff] %v1963_v5   ;;  %v1439_v37 = vadd.f32 %v2174_v19, %v1438_v33  ;;  %v1507_v38 = vadd.f32 %v1506_v32, %v1476_v34  ;;  %v2146_v39 = vpop.f32.mrb[28].mxu0 }
 0x140   : > { %v871_v40 = vpop.f32.mrb[29].mxu1  ;;  %v2178_v41 = vadd.f32 %v2146_v39, %v2112_v35  ;;  %v1207_v42 = vpop.f32.mrb[29].mxu0 }
 0x141   : > { %v2113_v43 = vpop.f32.mrb[30].mxu1  ;;  %v1508_v45 = vadd.f32 %v1507_v38, %v1477_v36  ;;  %v2179_v46 = vadd.f32 %v1207_v42, %v871_v40  ;;  %v1440_v47 = vadd.f32 %v2176_v26, %v1439_v37  ;;  %v2147_v48 = vpop.f32.mrb[30].mxu0 }
 0x142   : > { %v874_v49 = vpop.f32.mrb[31].mxu1  ;;  %v2180_v50 = vadd.f32 %v2147_v48, %v2113_v43  ;;  %v1210_v51 = vpop.f32.mrb[31].mxu0  ;;  %v1481_v61 = vmul.f32 %v2178_v41, %v2178_v41 }
 0x143   : > { %v1441_v52 = vadd.f32 %v2179_v46, %v1440_v47  ;;  %v1479_v53 = vmul.f32 %v2179_v46, %v2179_v46  ;;  %v1509_v54 = vadd.f32 %v1508_v45, %v1478_v44  ;;  %v2181_v55 = vadd.f32 %v1210_v51, %v874_v49 }
 0x144   : > { %v1978_v56 = vpack.c.bf16 %v2180_v50, %v2178_v41  ;;  %v1482_v7 = vmul.f32 %v2180_v50, %v2180_v50 }
 0x145   : > { %v1510_v57 = vadd.f32 %v1509_v54, %v1479_v53  ;;  %v1973_v58 = vpack.c.bf16 %v2181_v55, %v2179_v46  ;;  %v1442_v59 = vadd.f32 %v2181_v55, %v1441_v52  ;;  %v1480_v60 = vmul.f32 %v2181_v55, %v2181_v55 }
 0x146   : > { %1994 = vst [vmem:[%s2488_s29 + $0x78] sm:$0xff] %v1978_v56  }
 0x147   : > { %1993 = vst [vmem:[%s2488_s29 + $0x70] sm:$0xff] %v1973_v58   ;;  %v1443_v6 = vadd.f32 %v2178_v41, %v1442_v59  ;;  %v1511_v62 = vadd.f32 %v1510_v57, %v1480_v60 }
 0x149   : > { %v1444_v8 = vadd.f32 %v2180_v50, %v1443_v6  ;;  %v1512_v63 = vadd.f32 %v1511_v62, %v1481_v61 }
 0x14b   : > { %v1445_v9 = vrot.slane %v1444_v8, 4  ;;  %v1513_v10 = vadd.f32 %v1512_v63, %v1482_v7 }
 0x14d   : > { %v1446_v0 = vadd.f32 %v1445_v9, %v1444_v8  ;;  %v1514_v11 = vrot.slane %v1513_v10, 4 }
 0x14f   : > { %v1447_v12 = vrot.slane %v1446_v0, 2  ;;  %v1515_v1 = vadd.f32 %v1514_v11, %v1513_v10 }
 0x151   : > { %v1448_v13 = vadd.f32 %v1447_v12, %v1446_v0  ;;  %v1516_v14 = vrot.slane %v1515_v1, 2 }
 0x153   : > { %v1449_v15 = vrot.slane %v1448_v13, 1  ;;  %v1517_v16 = vadd.f32 %v1516_v14, %v1515_v1 }
 0x155   : > { %v1518_v17 = vrot.slane %v1517_v16, 1  ;;  %v1450_v18 = vadd.f32 %v1449_v15, %v1448_v13 }
 0x157   : > { %v1519_v19 = vadd.f32 %v1518_v17, %v1517_v16 }
 0x159   : > { %v1521_v20 = vsel %vm1520_vm2, %v1450_v18, %v1519_v19 }
 0x15a   : > { %1522 = vst [vmem:[%s211_s6] sm:$0x3] %v1521_v20 }
 0x15b PF: > { %s14_s14 = sadd.s32 1, %s2316_s14   ;;  %s2527_s12 = smov %s2312_s13 }
 0x15c   : > { %p11_p5 = scmp.ge.s32.totalorder %s14_s14, 4   ;;  %s2528_s13 = smov %s2530_s15 }
 0x15e   :  { %13 = sbr.rel (!%p11_p5) target bundleno = 2 (0x2), region = 75 }

</bundles_post_ra>
